<compile_context>
chip_gen: v7x
topology: tpu7x:2x2x1
jax: 0.10.0
libtpu: 0.0.40
codegen_flags: <defaults>
</compile_context>

<pallas_src>
import functools

import jax
import jax.numpy as jnp
from jax.experimental import pallas as pl
from jax.experimental.pallas import tpu as pltpu

BN_EPS = 1e-5

H1, H2, H3 = 128, 256, 16   # hidden widths from NN_4.__init__
H3P = 128                    # hidden-3 width zero-padded to a full lane width
DOP = 128                    # output width zero-padded to a full lane width
LANES = 256                  # packed-buffer lane width (= widest layer)


def _round_up(n, m):
    return ((n + m - 1) // m) * m


def _layout(d_in):
    """Static row offsets of each parameter block inside the packed buffer."""
    o_w1 = 0
    o_w2 = o_w1 + _round_up(d_in, 8)   # W1: (d_in, 128)
    o_w3 = o_w2 + H1                   # W2: (128, 256)
    o_w4 = o_w3 + H2                   # W3: (256, 16->128)
    o_vec = o_w4 + H3P                 # W4: (16->128, d_out->128)
    rows = _round_up(o_vec + 10, 8)    # 10 bias/gamma/beta rows (padded to 8)
    return o_w1, o_w2, o_w3, o_w4, o_vec, rows


def pack_params(params, d_in, d_out):
    """Pack the 14 NN_4 parameter arrays into ONE f32 buffer (single DMA)."""
    (w1, b1, g1, be1, w2, b2, g2, be2, w3, b3, g3, be3, w4, b4) = params
    o_w1, o_w2, o_w3, o_w4, o_vec, rows = _layout(d_in)
    buf = jnp.zeros((rows, LANES), jnp.float32)
    buf = buf.at[o_w1:o_w1 + d_in, :H1].set(w1)
    buf = buf.at[o_w2:o_w2 + H1, :H2].set(w2)
    buf = buf.at[o_w3:o_w3 + H2, :H3].set(w3)          # padded cols 16:128 stay 0
    buf = buf.at[o_w4:o_w4 + H3, :d_out].set(w4)       # padded rows/cols stay 0
    vec_rows = [(b1, H1), (g1, H1), (be1, H1),
                (b2, H2), (g2, H2), (be2, H2),
                (b3, H3), (g3, H3), (be3, H3),
                (b4, d_out)]
    for i, (v, n) in enumerate(vec_rows):
        buf = buf.at[o_vec + i, :n].set(v.reshape(-1))
    return buf


def _nn4_kernel(x_ref, p_ref, o_ref, *, d_in, offs, inv_batch):
    o_w1, o_w2, o_w3, o_w4, o_vec = offs

    def bn(h, g, be):
        # PyTorch BatchNorm1d training semantics (batch mean, biased variance,
        # eps=1e-5), computed as one-pass stats + fused per-feature scale/shift.
        s1 = jnp.sum(h, axis=0, keepdims=True)
        s2 = jnp.sum(h * h, axis=0, keepdims=True)
        mu = s1 * inv_batch
        var = s2 * inv_batch - mu * mu
        scale = jax.lax.rsqrt(var + BN_EPS) * g
        shift = be - mu * scale
        return h * scale + shift

    x = x_ref[...]

    # fc1 -> relu1 -> bn1
    w1 = p_ref[o_w1:o_w1 + d_in, :H1]
    h = jnp.dot(x, w1, preferred_element_type=jnp.float32) + p_ref[o_vec:o_vec + 1, :H1]
    h = jnp.maximum(h, 0.0)
    h = bn(h, p_ref[o_vec + 1:o_vec + 2, :H1], p_ref[o_vec + 2:o_vec + 3, :H1])

    # fc2 -> relu2 -> bn2
    w2 = p_ref[o_w2:o_w2 + H1, :H2]
    h = jnp.dot(h, w2, preferred_element_type=jnp.float32) + p_ref[o_vec + 3:o_vec + 4, :H2]
    h = jnp.maximum(h, 0.0)
    h = bn(h, p_ref[o_vec + 4:o_vec + 5, :H2], p_ref[o_vec + 5:o_vec + 6, :H2])

    # fc3 -> relu3 -> bn3  (width 16 zero-padded to 128 lanes; padded columns
    # stay exactly 0 through relu/BN and hit all-zero W4 rows afterwards)
    w3 = p_ref[o_w3:o_w3 + H2, :H3P]
    h = jnp.dot(h, w3, preferred_element_type=jnp.float32) + p_ref[o_vec + 6:o_vec + 7, :H3P]
    h = jnp.maximum(h, 0.0)
    h = bn(h, p_ref[o_vec + 7:o_vec + 8, :H3P], p_ref[o_vec + 8:o_vec + 9, :H3P])

    # fc4 (output padded to 128 lanes -> lane-dense, unmasked store)
    w4 = p_ref[o_w4:o_w4 + H3P, :DOP]
    out = jnp.dot(h, w4, preferred_element_type=jnp.float32) + p_ref[o_vec + 9:o_vec + 10, :DOP]
    o_ref[...] = out.astype(o_ref.dtype)


@functools.partial(jax.jit, static_argnames=("d_out",))
def nn4_forward(x, packed, d_out):
    batch, d_in = x.shape
    o_w1, o_w2, o_w3, o_w4, o_vec, _ = _layout(d_in)
    kernel = functools.partial(
        _nn4_kernel,
        d_in=d_in,
        offs=(o_w1, o_w2, o_w3, o_w4, o_vec),
        inv_batch=1.0 / batch,
    )
    vmem = pl.BlockSpec(memory_space=pltpu.MemorySpace.VMEM)
    out_pad = pl.pallas_call(
        kernel,
        out_shape=jax.ShapeDtypeStruct((batch, DOP), jnp.float32),
        in_specs=[vmem, vmem],
        out_specs=vmem,
    )(x, packed)
    return out_pad[:, :d_out]


def init_params(key, d_in, d_out):
    """Deterministic parameter init with the shapes implied by NN_4.__init__."""
    dims = [(d_in, H1), (H1, H2), (H2, H3), (H3, d_out)]
    params = []
    for i, (fan_in, fan_out) in enumerate(dims):
        kw, kb, key = jax.random.split(key, 3)
        bound = 1.0 / jnp.sqrt(fan_in)
        w = jax.random.uniform(kw, (fan_in, fan_out), jnp.float32, -bound, bound)
        b = jax.random.uniform(kb, (1, fan_out), jnp.float32, -bound, bound)
        params += [w, b]
        if i < 3:  # BatchNorm1d gamma/beta for the first three hidden layers
            params += [jnp.ones((1, fan_out), jnp.float32),
                       jnp.zeros((1, fan_out), jnp.float32)]
    return params


def _batchnorm_ref(h, gamma, beta):
    mu = jnp.mean(h, axis=0, keepdims=True)
    var = jnp.mean((h - mu) ** 2, axis=0, keepdims=True)
    return (h - mu) * jax.lax.rsqrt(var + BN_EPS) * gamma + beta


def nn4_reference(x, params):
    (w1, b1, g1, be1, w2, b2, g2, be2, w3, b3, g3, be3, w4, b4) = params
    h = jnp.maximum(x @ w1 + b1, 0.0)
    h = _batchnorm_ref(h, g1, be1)
    h = jnp.maximum(h @ w2 + b2, 0.0)
    h = _batchnorm_ref(h, g2, be2)
    h = jnp.maximum(h @ w3 + b3, 0.0)
    h = _batchnorm_ref(h, g3, be3)
    return h @ w4 + b4


if __name__ == "__main__":
    key = jax.random.PRNGKey(0)
    kx, kp = jax.random.split(key)

    batch, d_in, d_out = 8, 16, 4   # train_x.size(-1)=16, train_y.size(-1)=4
    x = jax.random.normal(kx, (batch, d_in), jnp.float32)
    params = init_params(kp, d_in, d_out)
    packed = pack_params(params, d_in, d_out)   # packed once, reused per call

    out = nn4_forward(x, packed, d_out=d_out)
    jax.block_until_ready(out)

    ref = nn4_reference(x, params)
    assert out.shape == (batch, d_out)
    assert jnp.allclose(out, ref, atol=5e-4, rtol=5e-4), "mismatch vs JAX reference"

    print("KERNEL_OK")
</pallas_src>

<mosaic_0001>
module attributes {stable_mosaic.version = 11 : i64} {
  func.func @_nn4_kernel(%arg0: memref<8x16xf32, #tpu.memory_space<vmem>>, %arg1: memref<544x256xf32, #tpu.memory_space<vmem>>, %arg2: memref<8x128xf32, #tpu.memory_space<vmem>>) attributes {dimension_semantics = [], scalar_prefetch = 0 : i64, scratch_operands = 0 : i64, tpu.core_type = #tpu.core_type<tc>} {
    %c0 = arith.constant 0 : index
    %c0_0 = arith.constant 0 : index
    %0 = vector.load %arg0[%c0, %c0_0] : memref<8x16xf32, #tpu.memory_space<vmem>>, vector<8x16xf32>
    %c0_1 = arith.constant 0 : index
    %c0_2 = arith.constant 0 : index
    %1 = vector.load %arg1[%c0_1, %c0_2] : memref<544x256xf32, #tpu.memory_space<vmem>>, vector<16x128xf32>
    %cst = arith.constant dense<0.000000e+00> : vector<8x128xf32>
    %2 = tpu.matmul %0, %1, %cst {dimension_numbers = #tpu.dot_dimension_numbers<[1], [0], [0], [1], [0, 0, 1, 1], [], []>} : vector<8x16xf32>, vector<16x128xf32>, vector<8x128xf32> -> vector<8x128xf32>
    %c528 = arith.constant 528 : index
    %c0_3 = arith.constant 0 : index
    %3 = vector.load %arg1[%c528, %c0_3] : memref<544x256xf32, #tpu.memory_space<vmem>>, vector<1x128xf32>
    %4 = vector.broadcast %3 : vector<1x128xf32> to vector<8x128xf32>
    %5 = arith.addf %2, %4 : vector<8x128xf32>
    %cst_4 = arith.constant 0.000000e+00 : f32
    %6 = vector.broadcast %cst_4 : f32 to vector<8x128xf32>
    %7 = arith.maximumf %5, %6 : vector<8x128xf32>
    %c529 = arith.constant 529 : index
    %c0_5 = arith.constant 0 : index
    %8 = vector.load %arg1[%c529, %c0_5] : memref<544x256xf32, #tpu.memory_space<vmem>>, vector<1x128xf32>
    %c530 = arith.constant 530 : index
    %c0_6 = arith.constant 0 : index
    %9 = vector.load %arg1[%c530, %c0_6] : memref<544x256xf32, #tpu.memory_space<vmem>>, vector<1x128xf32>
    %cst_7 = arith.constant dense<0.000000e+00> : vector<128xf32>
    %10 = vector.multi_reduction <add>, %7, %cst_7 [0] : vector<8x128xf32> to vector<128xf32>
    %11 = vector.shape_cast %10 : vector<128xf32> to vector<1x128xf32>
    %12 = arith.mulf %7, %7 : vector<8x128xf32>
    %cst_8 = arith.constant dense<0.000000e+00> : vector<128xf32>
    %13 = vector.multi_reduction <add>, %12, %cst_8 [0] : vector<8x128xf32> to vector<128xf32>
    %14 = vector.shape_cast %13 : vector<128xf32> to vector<1x128xf32>
    %cst_9 = arith.constant 1.250000e-01 : f32
    %15 = vector.broadcast %cst_9 : f32 to vector<1x128xf32>
    %16 = arith.mulf %11, %15 : vector<1x128xf32>
    %cst_10 = arith.constant 1.250000e-01 : f32
    %17 = vector.broadcast %cst_10 : f32 to vector<1x128xf32>
    %18 = arith.mulf %14, %17 : vector<1x128xf32>
    %19 = arith.mulf %16, %16 : vector<1x128xf32>
    %20 = arith.subf %18, %19 : vector<1x128xf32>
    %cst_11 = arith.constant 9.99999974E-6 : f32
    %21 = vector.broadcast %cst_11 : f32 to vector<1x128xf32>
    %22 = arith.addf %20, %21 : vector<1x128xf32>
    %23 = math.rsqrt %22 : vector<1x128xf32>
    %24 = arith.mulf %23, %8 : vector<1x128xf32>
    %25 = arith.mulf %16, %24 : vector<1x128xf32>
    %26 = arith.subf %9, %25 : vector<1x128xf32>
    %27 = vector.broadcast %24 : vector<1x128xf32> to vector<8x128xf32>
    %28 = arith.mulf %7, %27 : vector<8x128xf32>
    %29 = vector.broadcast %26 : vector<1x128xf32> to vector<8x128xf32>
    %30 = arith.addf %28, %29 : vector<8x128xf32>
    %c16 = arith.constant 16 : index
    %c0_12 = arith.constant 0 : index
    %31 = vector.load %arg1[%c16, %c0_12] : memref<544x256xf32, #tpu.memory_space<vmem>>, vector<128x256xf32>
    %cst_13 = arith.constant dense<0.000000e+00> : vector<8x256xf32>
    %32 = tpu.matmul %30, %31, %cst_13 {dimension_numbers = #tpu.dot_dimension_numbers<[1], [0], [0], [1], [0, 0, 1, 1], [], []>} : vector<8x128xf32>, vector<128x256xf32>, vector<8x256xf32> -> vector<8x256xf32>
    %c531 = arith.constant 531 : index
    %c0_14 = arith.constant 0 : index
    %33 = vector.load %arg1[%c531, %c0_14] : memref<544x256xf32, #tpu.memory_space<vmem>>, vector<1x256xf32>
    %34 = vector.broadcast %33 : vector<1x256xf32> to vector<8x256xf32>
    %35 = arith.addf %32, %34 : vector<8x256xf32>
    %cst_15 = arith.constant 0.000000e+00 : f32
    %36 = vector.broadcast %cst_15 : f32 to vector<8x256xf32>
    %37 = arith.maximumf %35, %36 : vector<8x256xf32>
    %c532 = arith.constant 532 : index
    %c0_16 = arith.constant 0 : index
    %38 = vector.load %arg1[%c532, %c0_16] : memref<544x256xf32, #tpu.memory_space<vmem>>, vector<1x256xf32>
    %c533 = arith.constant 533 : index
    %c0_17 = arith.constant 0 : index
    %39 = vector.load %arg1[%c533, %c0_17] : memref<544x256xf32, #tpu.memory_space<vmem>>, vector<1x256xf32>
    %cst_18 = arith.constant dense<0.000000e+00> : vector<256xf32>
    %40 = vector.multi_reduction <add>, %37, %cst_18 [0] : vector<8x256xf32> to vector<256xf32>
    %41 = vector.shape_cast %40 : vector<256xf32> to vector<1x256xf32>
    %42 = arith.mulf %37, %37 : vector<8x256xf32>
    %cst_19 = arith.constant dense<0.000000e+00> : vector<256xf32>
    %43 = vector.multi_reduction <add>, %42, %cst_19 [0] : vector<8x256xf32> to vector<256xf32>
    %44 = vector.shape_cast %43 : vector<256xf32> to vector<1x256xf32>
    %cst_20 = arith.constant 1.250000e-01 : f32
    %45 = vector.broadcast %cst_20 : f32 to vector<1x256xf32>
    %46 = arith.mulf %41, %45 : vector<1x256xf32>
    %cst_21 = arith.constant 1.250000e-01 : f32
    %47 = vector.broadcast %cst_21 : f32 to vector<1x256xf32>
    %48 = arith.mulf %44, %47 : vector<1x256xf32>
    %49 = arith.mulf %46, %46 : vector<1x256xf32>
    %50 = arith.subf %48, %49 : vector<1x256xf32>
    %cst_22 = arith.constant 9.99999974E-6 : f32
    %51 = vector.broadcast %cst_22 : f32 to vector<1x256xf32>
    %52 = arith.addf %50, %51 : vector<1x256xf32>
    %53 = math.rsqrt %52 : vector<1x256xf32>
    %54 = arith.mulf %53, %38 : vector<1x256xf32>
    %55 = arith.mulf %46, %54 : vector<1x256xf32>
    %56 = arith.subf %39, %55 : vector<1x256xf32>
    %57 = vector.broadcast %54 : vector<1x256xf32> to vector<8x256xf32>
    %58 = arith.mulf %37, %57 : vector<8x256xf32>
    %59 = vector.broadcast %56 : vector<1x256xf32> to vector<8x256xf32>
    %60 = arith.addf %58, %59 : vector<8x256xf32>
    %c144 = arith.constant 144 : index
    %c0_23 = arith.constant 0 : index
    %61 = vector.load %arg1[%c144, %c0_23] : memref<544x256xf32, #tpu.memory_space<vmem>>, vector<256x128xf32>
    %cst_24 = arith.constant dense<0.000000e+00> : vector<8x128xf32>
    %62 = tpu.matmul %60, %61, %cst_24 {dimension_numbers = #tpu.dot_dimension_numbers<[1], [0], [0], [1], [0, 0, 1, 1], [], []>} : vector<8x256xf32>, vector<256x128xf32>, vector<8x128xf32> -> vector<8x128xf32>
    %c534 = arith.constant 534 : index
    %c0_25 = arith.constant 0 : index
    %63 = vector.load %arg1[%c534, %c0_25] : memref<544x256xf32, #tpu.memory_space<vmem>>, vector<1x128xf32>
    %64 = vector.broadcast %63 : vector<1x128xf32> to vector<8x128xf32>
    %65 = arith.addf %62, %64 : vector<8x128xf32>
    %cst_26 = arith.constant 0.000000e+00 : f32
    %66 = vector.broadcast %cst_26 : f32 to vector<8x128xf32>
    %67 = arith.maximumf %65, %66 : vector<8x128xf32>
    %c535 = arith.constant 535 : index
    %c0_27 = arith.constant 0 : index
    %68 = vector.load %arg1[%c535, %c0_27] : memref<544x256xf32, #tpu.memory_space<vmem>>, vector<1x128xf32>
    %c536 = arith.constant 536 : index
    %c0_28 = arith.constant 0 : index
    %69 = vector.load %arg1[%c536, %c0_28] : memref<544x256xf32, #tpu.memory_space<vmem>>, vector<1x128xf32>
    %cst_29 = arith.constant dense<0.000000e+00> : vector<128xf32>
    %70 = vector.multi_reduction <add>, %67, %cst_29 [0] : vector<8x128xf32> to vector<128xf32>
    %71 = vector.shape_cast %70 : vector<128xf32> to vector<1x128xf32>
    %72 = arith.mulf %67, %67 : vector<8x128xf32>
    %cst_30 = arith.constant dense<0.000000e+00> : vector<128xf32>
    %73 = vector.multi_reduction <add>, %72, %cst_30 [0] : vector<8x128xf32> to vector<128xf32>
    %74 = vector.shape_cast %73 : vector<128xf32> to vector<1x128xf32>
    %cst_31 = arith.constant 1.250000e-01 : f32
    %75 = vector.broadcast %cst_31 : f32 to vector<1x128xf32>
    %76 = arith.mulf %71, %75 : vector<1x128xf32>
    %cst_32 = arith.constant 1.250000e-01 : f32
    %77 = vector.broadcast %cst_32 : f32 to vector<1x128xf32>
    %78 = arith.mulf %74, %77 : vector<1x128xf32>
    %79 = arith.mulf %76, %76 : vector<1x128xf32>
    %80 = arith.subf %78, %79 : vector<1x128xf32>
    %cst_33 = arith.constant 9.99999974E-6 : f32
    %81 = vector.broadcast %cst_33 : f32 to vector<1x128xf32>
    %82 = arith.addf %80, %81 : vector<1x128xf32>
    %83 = math.rsqrt %82 : vector<1x128xf32>
    %84 = arith.mulf %83, %68 : vector<1x128xf32>
    %85 = arith.mulf %76, %84 : vector<1x128xf32>
    %86 = arith.subf %69, %85 : vector<1x128xf32>
    %87 = vector.broadcast %84 : vector<1x128xf32> to vector<8x128xf32>
    %88 = arith.mulf %67, %87 : vector<8x128xf32>
    %89 = vector.broadcast %86 : vector<1x128xf32> to vector<8x128xf32>
    %90 = arith.addf %88, %89 : vector<8x128xf32>
    %c400 = arith.constant 400 : index
    %c0_34 = arith.constant 0 : index
    %91 = vector.load %arg1[%c400, %c0_34] : memref<544x256xf32, #tpu.memory_space<vmem>>, vector<128x128xf32>
    %cst_35 = arith.constant dense<0.000000e+00> : vector<8x128xf32>
    %92 = tpu.matmul %90, %91, %cst_35 {dimension_numbers = #tpu.dot_dimension_numbers<[1], [0], [0], [1], [0, 0, 1, 1], [], []>} : vector<8x128xf32>, vector<128x128xf32>, vector<8x128xf32> -> vector<8x128xf32>
    %c537 = arith.constant 537 : index
    %c0_36 = arith.constant 0 : index
    %93 = vector.load %arg1[%c537, %c0_36] : memref<544x256xf32, #tpu.memory_space<vmem>>, vector<1x128xf32>
    %94 = vector.broadcast %93 : vector<1x128xf32> to vector<8x128xf32>
    %95 = arith.addf %92, %94 : vector<8x128xf32>
    %c0_37 = arith.constant 0 : index
    %c0_38 = arith.constant 0 : index
    %96 = vector.load %arg2[%c0_37, %c0_38] : memref<8x128xf32, #tpu.memory_space<vmem>>, vector<8x128xf32>
    tpu.vector_store %arg2[%c0_37, %c0_38], %95 {strides = array<i32>} : memref<8x128xf32, #tpu.memory_space<vmem>>, vector<8x128xf32>,
    return
  }
}

</mosaic_0001>

<bundles_post_ra>
// kernel: nn4_forward.1
= control target key start
LH: loop header
LB: loop body
LE: loop exit
PB: predicated region body
PF: predicated region fallthrough
CT: control target
= control target key end

     0   :  { %7 = vsyncpa [#allocation3], 0  ;;  %s919_s0 = inlined_call_operand.hbm [shape: f32[8,16], index: 0, kind: input, shape index: {}]   ;;  %s920_s1 = inlined_call_operand.hbm [shape: f32[544,256], index: 1, kind: input, shape index: {}]   ;;  %s921_s2 = inlined_call_operand.vmem [shape: f32[8,128], index: 2, kind: output, shape index: {}]  }
   0x1   :  { %8 = vsyncpa [#allocation5], 0  ;;  %s836_s9 = smov [#allocation2]   ;;  %s837_s11 = smov [#allocation4]  }
   0x2   :  { %s15_s10 = sshll.u32 %s836_s9, 4  ;;  %s24_s12 = sshll.u32 %s837_s11, 4  ;;  %s16_s10 = int_to_ptr.vmem [resolvable:$true] %s15_s10  ;;  %s859_s12 = int_to_ptr.vmem [resolvable:$true] %s24_s12 }
   0x3   :  { %s788_s15 = scalar_lea.hbm %s919_s0, 128 }
   0x4   :  { %p789_p0 = scmp.ne.s32.totalorder %s919_s0, %s788_s15  ;;  %p792_p1 = scmp.lt.u32.totalorder %s788_s15, %s919_s0 }
   0x6   :  { %p794_p2 = pnand %p792_p1, %p789_p0 }
   0x8   :  { %797 = shalt.err (!%p794_p2)
}
   0x9   :  { %s798_s20 = scalar_lea.vmem %s16_s10, 128  ;;  %p803_p4 = scmp.lt.s32.totalorder %s16_s10, %s16_s10 }
   0xa   :  { %p799_p3 = scmp.ne.s32.totalorder %s16_s10, %s798_s20  ;;  %p804_p5 = scmp.lt.s32.totalorder %s798_s20, %s798_s20 }
   0xc   :  { %p805_p6 = por %p804_p5, %p803_p4 }
   0xe   :  { %p806_p7 = pnand %p805_p6, %p799_p3 }
  0x10   :  { %809 = shalt.err (!%p806_p7)
}
  0x11   :  { %18 = dma.hbm_to_vmem [thread:$0]  %s919_s0, 128, %s16_s10, [#allocation3]  }
  0x12   :  { %s810_s25 = scalar_lea.hbm %s920_s1, 17408 }
  0x13   :  { %p811_p8 = scmp.ne.s32.totalorder %s920_s1, %s810_s25  ;;  %p814_p9 = scmp.lt.u32.totalorder %s810_s25, %s920_s1 }
  0x15   :  { %p816_p10 = pnand %p814_p9, %p811_p8 }
  0x17   :  { %819 = shalt.err (!%p816_p10)
}
  0x18   :  { %s820_s30 = scalar_lea.vmem %s859_s12, 17408  ;;  %p825_p12 = scmp.lt.s32.totalorder %s859_s12, %s859_s12 }
  0x19   :  { %p821_p11 = scmp.ne.s32.totalorder %s859_s12, %s820_s30  ;;  %p826_p13 = scmp.lt.s32.totalorder %s820_s30, %s820_s30 }
  0x1b   :  { %p827_p0 = por %p826_p13, %p825_p12 }
  0x1d   :  { %p828_p1 = pnand %p827_p0, %p821_p11 }
  0x1f   :  { %831 = shalt.err (!%p828_p1)
}
  0x20   :  { %s838_s0 = smov 256   ;;  %s839_s3 = smov 16  }
  0x21   :  { %30 = dma.hbm_to_vmem [thread:$0]  %s920_s1, 17408, %s859_s12, [#allocation5], %s838_s0, %s838_s0, %s839_s3  }
  0x22   :  { %832 = dma.done.wait [#allocation3], 128  }
  0x23   :  { %833 = vsyncadd [#allocation3], 4294967168 }
  0x24   :  { %834 = dma.done.wait [#allocation5], 17408  }
  0x25   :  { %835 = vsyncadd [#allocation5], 4294949888  ;;  %v840_v0 = vmov 0.0|0.0   ;;  %vm841_vm0 = vmmov 0   ;;  %v842_v1 = vmov 0.0   ;;  %v38_v2 = vld [vmem:[#allocation4] sm:$0xff] }
  0x26   :  { %681 = vmatprep.subr.bf16.mxu0 %v840_v0  ;;  %643 = vmatprep.mubr.msk.f32.mxu0 %vm841_vm0, %v842_v1  ;;  %v39_v3 = vld [vmem:[#allocation4 + $0x10] sm:$0xff]  ;;  %v37_v5 = vld [vmem:[#allocation2] sm:$0xff]  ;;  %vm41_vm1 = vcmask 130048   ;;  %v143_v6 = vld [vmem:[#allocation4 + $0x28] sm:$0xff] }
  0x27   :  { %251 = vmatprep.mubr.f32.mxu1 %v842_v1  ;;  %v682_v4 = vpack.c.bf16 %v39_v3, %v38_v2  ;;  %v145_v7 = vld [vmem:[#allocation4 + $0x38] sm:$0xff]  ;;  %v142_v9 = vld [vmem:[#allocation4 + $0x20] sm:$0xff]  ;;  %v144_v10 = vld [vmem:[#allocation4 + $0x30] sm:$0xff] }
  0x28   :  { %v684_v8 = vpack.c.bf16 %v145_v7, %v143_v6  ;;  %v686_v11 = vpack.c.bf16 %v144_v10, %v142_v9  ;;  %v147_v12 = vld [vmem:[#allocation4 + $0x48] sm:$0xff]  ;;  %v149_v13 = vld [vmem:[#allocation4 + $0x58] sm:$0xff]  ;;  %v146_v15 = vld [vmem:[#allocation4 + $0x40] sm:$0xff] }
  0x29   :  { %683 = vmatpush3.bf16.msra.mxu0 %v682_v4  ;;  %v688_v14 = vpack.c.bf16 %v149_v13, %v147_v12  ;;  %v148_v16 = vld [vmem:[#allocation4 + $0x50] sm:$0xff]  ;;  %v151_v18 = vld [vmem:[#allocation4 + $0x68] sm:$0xff]  ;;  %v153_v19 = vld [vmem:[#allocation4 + $0x78] sm:$0xff] }
  0x2a   :  { %685 = vmatprep.subr.bf16.mxu1 %v684_v8  ;;  %v690_v17 = vpack.c.bf16 %v148_v16, %v146_v15  ;;  %v692_v20 = vpack.c.bf16 %v153_v19, %v151_v18  ;;  %v150_v21 = vld [vmem:[#allocation4 + $0x60] sm:$0xff]  ;;  %v152_v22 = vld [vmem:[#allocation4 + $0x70] sm:$0xff]  ;;  %v155_v24 = vld [vmem:[#allocation4 + $0x88] sm:$0xff] }
  0x2b   :  { %687 = vmatpush1.bf16.msra.mxu1 %v686_v11  ;;  %v694_v23 = vpack.c.bf16 %v152_v22, %v150_v21  ;;  %v157_v25 = vld [vmem:[#allocation4 + $0x98] sm:$0xff]  ;;  %v154_v26 = vld [vmem:[#allocation4 + $0x80] sm:$0xff]  ;;  %v156_v28 = vld [vmem:[#allocation4 + $0x90] sm:$0xff] }
  0x2c   :  { %644 = vmatmul.mubr.msk.f32.vlgmr.msra.gmra.mrb[0].mxu0 %vm41_vm1, %v37_v5  ;;  %689 = vmatprep.subr.bf16.mxu1 %v688_v14  ;;  %v696_v27 = vpack.c.bf16 %v157_v25, %v155_v24  ;;  %v159_v29 = vld [vmem:[#allocation4 + $0xa8] sm:$0xff]  ;;  %v161_v30 = vld [vmem:[#allocation4 + $0xb8] sm:$0xff]  ;;  %v698_v31 = vpack.c.bf16 %v156_v28, %v154_v26  ;;  %v158_v33 = vld [vmem:[#allocation4 + $0xa0] sm:$0xff] }
  0x2d   :  { %v700_v32 = vpack.c.bf16 %v161_v30, %v159_v29  ;;  %v160_v34 = vld [vmem:[#allocation4 + $0xb0] sm:$0xff]  ;;  %v163_v35 = vld [vmem:[#allocation4 + $0xc8] sm:$0xff]  ;;  %v165_v36 = vld [vmem:[#allocation4 + $0xd8] sm:$0xff] }
  0x2e   :  { %v702_v37 = vpack.c.bf16 %v160_v34, %v158_v33  ;;  %v704_v38 = vpack.c.bf16 %v165_v36, %v163_v35  ;;  %v162_v39 = vld [vmem:[#allocation4 + $0xc0] sm:$0xff]  ;;  %v164_v40 = vld [vmem:[#allocation4 + $0xd0] sm:$0xff]  ;;  %v167_v41 = vld [vmem:[#allocation4 + $0xe8] sm:$0xff] }
  0x2f   :  { %691 = vmatpush1.bf16.msra.mxu1 %v690_v17  ;;  %v169_v42 = vld [vmem:[#allocation4 + $0xf8] sm:$0xff]  ;;  %v706_v43 = vpack.c.bf16 %v164_v40, %v162_v39  ;;  %v166_v45 = vld [vmem:[#allocation4 + $0xe0] sm:$0xff]  ;;  %v168_v46 = vld [vmem:[#allocation4 + $0xf0] sm:$0xff] }
  0x30   :  { %693 = vmatprep.subr.bf16.mxu1 %v692_v20  ;;  %v708_v44 = vpack.c.bf16 %v169_v42, %v167_v41  ;;  %v171_v47 = vld [vmem:[#allocation4 + $0x108] sm:$0xff]  ;;  %v173_v48 = vld [vmem:[#allocation4 + $0x118] sm:$0xff]  ;;  %v710_v49 = vpack.c.bf16 %v168_v46, %v166_v45  ;;  %v170_v51 = vld [vmem:[#allocation4 + $0x100] sm:$0xff] }
  0x31   :  { %v712_v50 = vpack.c.bf16 %v173_v48, %v171_v47  ;;  %v172_v52 = vld [vmem:[#allocation4 + $0x110] sm:$0xff]  ;;  %v40_v54 = vld [vmem:[#allocation4 + $0x420] ss:$0 sm:$0xff]  ;;  %v116_v15 = vld [vmem:[#allocation4 + $0x421] ss:$0 sm:$0xff] }
  0x32   :  { %v714_v53 = vpack.c.bf16 %v172_v52, %v170_v51  ;;  %v117_v18 = vld [vmem:[#allocation4 + $0x422] ss:$0 sm:$0xff]  ;;  %v376_v24 = vld [vmem:[#allocation4 + $0x230] sm:$0xff] }
  0x33   :  { %695 = vmatpush1.bf16.msra.mxu1 %v694_v23  ;;  %v375_v23 = vld [vmem:[#allocation4 + $0x220] sm:$0xff]  ;;  %v378_v30 = vld [vmem:[#allocation4 + $0x250] sm:$0xff] }
  0x34   :  { %697 = vmatprep.subr.bf16.mxu1 %v696_v27  ;;  %v716_v25 = vpack.c.bf16 %v376_v24, %v375_v23  ;;  %v359_v26 = vld [vmem:[#allocation4 + $0x120] sm:$0xff]  ;;  %v360_v27 = vld [vmem:[#allocation4 + $0x130] sm:$0xff] }
  0x35   :  { %v718_v28 = vpack.c.bf16 %v360_v27, %v359_v26  ;;  %v377_v29 = vld [vmem:[#allocation4 + $0x240] sm:$0xff]  ;;  %v362_v33 = vld [vmem:[#allocation4 + $0x150] sm:$0xff] }
  0x36   :  { %717 = vmatprep.subr.bf16.mxu0 %v716_v25  ;;  %v379_v35 = vld [vmem:[#allocation4 + $0x260] sm:$0xff]  ;;  %v380_v36 = vld [vmem:[#allocation4 + $0x270] sm:$0xff] }
  0x37   :  { %699 = vmatpush1.bf16.msra.mxu1 %v698_v31  ;;  %719 = vmatpush3.bf16.msra.mxu0 %v718_v28  ;;  %v720_v31 = vpack.c.bf16 %v378_v30, %v377_v29  ;;  %v381_v40 = vld [vmem:[#allocation4 + $0x280] sm:$0xff]  ;;  %v382_v41 = vld [vmem:[#allocation4 + $0x290] sm:$0xff] }
  0x38   :  { %701 = vmatprep.subr.bf16.mxu1 %v700_v32  ;;  %v361_v32 = vld [vmem:[#allocation4 + $0x140] sm:$0xff]  ;;  %v728_v42 = vpack.c.bf16 %v382_v41, %v381_v40  ;;  %v384_v47 = vld [vmem:[#allocation4 + $0x2b0] sm:$0xff] }
  0x39   :  { %v722_v34 = vpack.c.bf16 %v362_v33, %v361_v32  ;;  %721 = vmatprep.subr.bf16.mxu0 %v720_v31  ;;  %v383_v46 = vld [vmem:[#allocation4 + $0x2a0] sm:$0xff] }
  0x3a   :  { %v732_v48 = vpack.c.bf16 %v384_v47, %v383_v46  ;;  %v385_v52 = vld [vmem:[#allocation4 + $0x2c0] sm:$0xff] }
  0x3b   :  { %703 = vmatpush1.bf16.msra.mxu1 %v702_v37  ;;  %723 = vmatpush3.bf16.msra.mxu0 %v722_v34  ;;  %v724_v37 = vpack.c.bf16 %v380_v36, %v379_v35 }
  0x3c   :  { %705 = vmatprep.subr.bf16.mxu1 %v704_v38  ;;  %v364_v38 = vld [vmem:[#allocation4 + $0x170] sm:$0xff] }
  0x3d   :  { %725 = vmatprep.subr.bf16.mxu0 %v724_v37 }
  0x3f   :  { %707 = vmatpush1.bf16.msra.mxu1 %v706_v43  ;;  %v365_v43 = vld [vmem:[#allocation4 + $0x180] sm:$0xff] }
  0x40   :  { %709 = vmatprep.subr.bf16.mxu1 %v708_v44  ;;  %v366_v44 = vld [vmem:[#allocation4 + $0x190] sm:$0xff] }
  0x41   :  { %v730_v45 = vpack.c.bf16 %v366_v44, %v365_v43 }
  0x43   :  { %711 = vmatpush1.bf16.msra.mxu1 %v710_v49  ;;  %v367_v49 = vld [vmem:[#allocation4 + $0x1a0] sm:$0xff] }
  0x44   :  { %713 = vmatprep.subr.bf16.mxu1 %v712_v50  ;;  %v368_v50 = vld [vmem:[#allocation4 + $0x1b0] sm:$0xff] }
  0x45   :  { %v734_v51 = vpack.c.bf16 %v368_v50, %v367_v49 }
  0x47   :  { %715 = vmatpush1.bf16.msra.mxu1 %v714_v53  ;;  %v386_v53 = vld [vmem:[#allocation4 + $0x2d0] sm:$0xff] }
  0x48   :  { %748 = vmatprep.subr.bf16.mxu1 %v840_v0 }
  0xff   :  { %v111_v55 = vpop.f32.mrb[0].mxu0 }
 0x100   :  { %v112_v56 = vadd.f32 %v111_v55, %v40_v54  ;;  %v645_v57 = vpop.f32.mrb[1].mxu0  ;;  %v736_v54 = vpack.c.bf16 %v386_v53, %v385_v52  ;;  %v369_v55 = vld [vmem:[#allocation4 + $0x1c0] sm:$0xff] }
 0x101   :  { %v387_v57 = vld [vmem:[#allocation4 + $0x2e0] sm:$0xff] }
 0x102   :  { %v115_v58 = vmax.f32 %v112_v56, 0.0  ;;  %v370_v56 = vld [vmem:[#allocation4 + $0x1d0] sm:$0xff] }
 0x104   :  { %v118_v59 = vrot.slane %v115_v58, 4  ;;  %v124_v60 = vmul.f32 %v115_v58, %v115_v58 }
 0x106   :  { %v119_v61 = vadd.f32 %v118_v59, %v115_v58  ;;  %v125_v62 = vrot.slane %v124_v60, 4  ;;  %v388_v59 = vld [vmem:[#allocation4 + $0x2f0] sm:$0xff] }
 0x108   :  { %v120_v63 = vrot.slane %v119_v61, 2  ;;  %v126_v2 = vadd.f32 %v125_v62, %v124_v60  ;;  %v371_v60 = vld [vmem:[#allocation4 + $0x1e0] sm:$0xff]  ;;  %v740_v62 = vpack.c.bf16 %v388_v59, %v387_v57  ;;  %v843_v57 = vmov 1966171168  }
 0x10a   :  { %v121_v3 = vadd.f32 %v120_v63, %v119_v61  ;;  %v127_v4 = vrot.slane %v126_v2, 2  ;;  %v372_v61 = vld [vmem:[#allocation4 + $0x1f0] sm:$0xff]  ;;  %v389_v63 = vld [vmem:[#allocation4 + $0x300] sm:$0xff] }
 0x10c   :  { %v128_v5 = vadd.f32 %v127_v4, %v126_v2  ;;  %v122_v6 = vrot.slane %v121_v3, 1  ;;  %v390_v2 = vld [vmem:[#allocation4 + $0x310] sm:$0xff] }
 0x10d   :  { %v744_v4 = vpack.c.bf16 %v390_v2, %v389_v63 }
 0x10e   :  { %v129_v7 = vrot.slane %v128_v5, 1  ;;  %v123_v8 = vadd.f32 %v122_v6, %v121_v3  ;;  %v742_v3 = vpack.c.bf16 %v372_v61, %v371_v60  ;;  %v374_v6 = vld [vmem:[#allocation4 + $0x210] sm:$0xff] }
 0x110   :  { %v130_v9 = vadd.f32 %v129_v7, %v128_v5  ;;  %v131_v10 = vmul.f32 0.125, %v123_v8  ;;  %v373_v5 = vld [vmem:[#allocation4 + $0x200] sm:$0xff]  ;;  %v177_v8 = vlaneseq }
 0x111   :  { %v746_v7 = vpack.c.bf16 %v374_v6, %v373_v5 }
 0x112   :  { %v132_v11 = vmul.f32 0.125, %v130_v9  ;;  %v133_v12 = vmul.f32 %v131_v10, %v131_v10  ;;  %v178_v9 = vshrl.u32 %v177_v8, 7 }
 0x114   :  { %v134_v13 = vsub.f32 %v132_v11, %v133_v12  ;;  %v175_v11 = vld [vmem:[#allocation4 + $0x423] ss:$8 sm:$0x3]  ;;  %v899_v12 = vsub.s32 1, %v178_v9 }
 0x116   :  { %v135_v14 = vadd.f32 1e-05, %v134_v13 }
 0x118   :  { %780 = vrsqrt.f32 %v135_v14  ;;  %v184_v14 = vrot.slane %v175_v11, %v899_v12 }
 0x122   :  { %v781_v16 = vpop.eup %780 }
 0x123   :  { %v137_v17 = vmul.f32 %v781_v16, %v116_v15 }
 0x125   :  { %v138_v19 = vmul.f32 %v137_v17, %v131_v10  ;;  %v140_v21 = vmul.f32 %v137_v17, %v115_v58  ;;  %v738_v58 = vpack.c.bf16 %v370_v56, %v369_v55  ;;  %v897_v10 = vsub.s32 0, %v178_v9  ;;  %v261_v56 = vld [vmem:[#allocation4 + $0x424] ss:$8 sm:$0x3] }
 0x126   :  { %v310_v60 = vrot.slane %v261_v56, %v899_v12 }
 0x127   :  { %v139_v20 = vsub.f32 %v117_v18, %v138_v19  ;;  %v180_v13 = vrot.slane %v175_v11, %v897_v10  ;;  %v306_v59 = vrot.slane %v261_v56, %v897_v10  ;;  %v263_v11 = vld [vmem:[#allocation4 + $0x425] ss:$8 sm:$0x3] }
 0x129   :  { %v141_v22 = vadd.f32 %v140_v21, %v139_v20 }
 0x12b   :  { %252 = vmatmul.mubr.f32.vlgmr.msra.gmra.mrb[0].mxu1 %v141_v22 }
 0x12c   :  { %678 = vmatprep.mubr.msk.f32.mxu1 %vm841_vm0, %v842_v1  ;;  %v363_v1 = vld [vmem:[#allocation4 + $0x160] sm:$0xff] }
 0x12d   :  { %v726_v39 = vpack.c.bf16 %v364_v38, %v363_v1 }
 0x12f   :  { %727 = vmatpush3.bf16.msra.mxu0 %v726_v39 }
 0x130   :  { %729 = vmatprep.subr.bf16.mxu0 %v728_v42 }
 0x133   :  { %731 = vmatpush3.bf16.msra.mxu0 %v730_v45 }
 0x134   :  { %733 = vmatprep.subr.bf16.mxu0 %v732_v48 }
 0x137   :  { %735 = vmatpush3.bf16.msra.mxu0 %v734_v51 }
 0x138   :  { %737 = vmatprep.subr.bf16.mxu0 %v736_v54 }
 0x13b   :  { %739 = vmatpush3.bf16.msra.mxu0 %v738_v58  ;;  %v321_v58 = vunpack.c.l.s4 %v843_v57 }
 0x13c   :  { %741 = vmatprep.subr.bf16.mxu0 %v740_v62 }
 0x13d   :  { %v322_v62 = vunpack.c.0.s8 %v321_v58 }
 0x13f   :  { %743 = vmatpush3.bf16.msra.mxu0 %v742_v3  ;;  %v325_v6 = vsub.s32 %v322_v62, %v178_v9  ;;  %v489_v9 = vld [vmem:[#allocation4 + $0x320] sm:$0xff] }
 0x140   :  { %745 = vmatprep.subr.bf16.mxu0 %v744_v4 }
 0x143   :  { %747 = vmatpush3.bf16.msra.mxu0 %v746_v7 }
 0x1fe   :  { %v253_v15 = vpop.f32.mrb[0].mxu1 }
 0x1ff   :  { %v254_v16 = vadd.f32 %v253_v15, %v180_v13  ;;  %v255_v17 = vpop.f32.mrb[1].mxu1 }
 0x200   :  { %v256_v18 = vadd.f32 %v255_v17, %v184_v14 }
 0x201   :  { %v258_v19 = vmax.f32 %v254_v16, 0.0 }
 0x202   :  { %v259_v20 = vmax.f32 %v256_v18, 0.0 }
 0x203   :  { %v264_v21 = vrot.slane %v258_v19, 4  ;;  %v276_v22 = vmul.f32 %v258_v19, %v258_v19 }
 0x204   :  { %v270_v23 = vrot.slane %v259_v20, 4  ;;  %v277_v24 = vmul.f32 %v259_v20, %v259_v20 }
 0x205   :  { %v265_v25 = vadd.f32 %v264_v21, %v258_v19  ;;  %v278_v26 = vrot.slane %v276_v22, 4 }
 0x206   :  { %v271_v27 = vadd.f32 %v270_v23, %v259_v20  ;;  %v284_v28 = vrot.slane %v277_v24, 4 }
 0x207   :  { %v266_v29 = vrot.slane %v265_v25, 2  ;;  %v279_v30 = vadd.f32 %v278_v26, %v276_v22 }
 0x208   :  { %v272_v31 = vrot.slane %v271_v27, 2  ;;  %v285_v32 = vadd.f32 %v284_v28, %v277_v24  ;;  %v492_v28 = vld [vmem:[#allocation4 + $0x350] sm:$0xff] }
 0x209   :  { %v267_v33 = vadd.f32 %v266_v29, %v265_v25  ;;  %v280_v34 = vrot.slane %v279_v30, 2  ;;  %v490_v25 = vld [vmem:[#allocation4 + $0x330] sm:$0xff] }
 0x20a   :  { %v273_v35 = vadd.f32 %v272_v31, %v271_v27  ;;  %v286_v36 = vrot.slane %v285_v32, 2  ;;  %v749_v26 = vpack.c.bf16 %v490_v25, %v489_v9  ;;  %v491_v27 = vld [vmem:[#allocation4 + $0x340] sm:$0xff] }
 0x20b   :  { %v268_v37 = vrot.slane %v267_v33, 1  ;;  %v281_v1 = vadd.f32 %v280_v34, %v279_v30  ;;  %v752_v29 = vpack.c.bf16 %v492_v28, %v491_v27  ;;  %v496_v30 = vld [vmem:[#allocation4 + $0x390] sm:$0xff] }
 0x20c   :  { %v274_v38 = vrot.slane %v273_v35, 1  ;;  %v287_v39 = vadd.f32 %v286_v36, %v285_v32  ;;  %750 = vmatpush3.bf16.msra.mxu1 %v749_v26  ;;  %v497_v32 = vld [vmem:[#allocation4 + $0x3a0] sm:$0xff]  ;;  %v500_v36 = vld [vmem:[#allocation4 + $0x3d0] sm:$0xff] }
 0x20d   :  { %v269_v40 = vadd.f32 %v268_v37, %v267_v33  ;;  %v282_v41 = vrot.slane %v281_v1, 1  ;;  %751 = vmatprep.subr.bf16.mxu1 %v840_v0  ;;  %v498_v33 = vld [vmem:[#allocation4 + $0x3b0] sm:$0xff] }
 0x20e   :  { %v275_v42 = vadd.f32 %v274_v38, %v273_v35  ;;  %v288_v43 = vrot.slane %v287_v39, 1  ;;  %v761_v34 = vpack.c.bf16 %v498_v33, %v497_v32  ;;  %v499_v35 = vld [vmem:[#allocation4 + $0x3c0] sm:$0xff]  ;;  %v502_v38 = vld [vmem:[#allocation4 + $0x3f0] sm:$0xff] }
 0x20f   :  { %v283_v44 = vadd.f32 %v282_v41, %v281_v1  ;;  %v290_v45 = vmul.f32 0.125, %v269_v40  ;;  %v764_v37 = vpack.c.bf16 %v500_v36, %v499_v35  ;;  %v501_v1 = vld [vmem:[#allocation4 + $0x3e0] sm:$0xff]  ;;  %v504_v41 = vld [vmem:[#allocation4 + $0x410] sm:$0xff] }
 0x210   :  { %v289_v46 = vadd.f32 %v288_v43, %v287_v39  ;;  %v291_v47 = vmul.f32 0.125, %v275_v42  ;;  %753 = vmatpush3.bf16.msra.mxu1 %v752_v29  ;;  %v767_v39 = vpack.c.bf16 %v502_v38, %v501_v1  ;;  %v503_v40 = vld [vmem:[#allocation4 + $0x400] sm:$0xff] }
 0x211   :  { %v292_v48 = vmul.f32 0.125, %v283_v44  ;;  %v294_v49 = vmul.f32 %v290_v45, %v290_v45  ;;  %754 = vmatprep.subr.bf16.mxu1 %v840_v0  ;;  %v770_v42 = vpack.c.bf16 %v504_v41, %v503_v40  ;;  %v391_v44 = vld [vmem:[#allocation4 + $0x426] ss:$0 sm:$0xff] }
 0x212   :  { %v293_v50 = vmul.f32 0.125, %v289_v46  ;;  %v295_v51 = vmul.f32 %v291_v47, %v291_v47 }
 0x213   :  { %v296_v52 = vsub.f32 %v292_v48, %v294_v49 }
 0x214   :  { %v297_v53 = vsub.f32 %v293_v50, %v295_v51 }
 0x215   :  { %v298_v54 = vadd.f32 1e-05, %v296_v52 }
 0x216   :  { %v299_v55 = vadd.f32 1e-05, %v297_v53 }
 0x217   :  { %782 = vrsqrt.f32 %v298_v54 }
 0x218   :  { %784 = vrsqrt.f32 %v299_v55 }
 0x221   :  { %v783_v61 = vpop.eup %782 }
 0x222   :  { %v785_v63 = vpop.eup %784  ;;  %v313_v2 = vmul.f32 %v783_v61, %v306_v59 }
 0x223   :  { %v314_v3 = vmul.f32 %v785_v63, %v310_v60 }
 0x224   :  { %v315_v4 = vmul.f32 %v313_v2, %v290_v45  ;;  %v339_v13 = vrot.slane %v313_v2, %v897_v10 }
 0x225   :  { %v316_v5 = vmul.f32 %v314_v3, %v291_v47  ;;  %v343_v15 = vrot.slane %v314_v3, %v897_v10 }
 0x226   :  { %v344_v17 = vmul.f32 %v339_v13, %v258_v19  ;;  %v493_v19 = vld [vmem:[#allocation4 + $0x360] sm:$0xff] }
 0x227   :  { %v319_v7 = vcombine.low %v315_v4, %v316_v5  ;;  %v345_v18 = vmul.f32 %v343_v15, %v259_v20  ;;  %v463_v4 = vld [vmem:[#allocation4 + $0x427] ss:$0 sm:$0xff]  ;;  %v505_v15 = vld [vmem:[#allocation4 + $0x431] ss:$0 sm:$0xff] }
 0x229   :  { %v326_v8 = vrot.slane %v319_v7, %v325_v6  ;;  %v464_v7 = vld [vmem:[#allocation4 + $0x430] ss:$0 sm:$0xff] }
 0x22b   :  { %v333_v14 = vrot.slane %v326_v8, %v325_v6 }
 0x22d   :  { %v335_v16 = vsub.f32 %v263_v11, %v333_v14 }
 0x22f   :  { %v354_v21 = vrot.slane %v335_v16, %v899_v12  ;;  %v350_v22 = vrot.slane %v335_v16, %v897_v10  ;;  %v494_v12 = vld [vmem:[#allocation4 + $0x370] sm:$0xff]  ;;  %v495_v10 = vld [vmem:[#allocation4 + $0x380] sm:$0xff] }
 0x230   :  { %v755_v20 = vpack.c.bf16 %v494_v12, %v493_v19  ;;  %v758_v31 = vpack.c.bf16 %v496_v30, %v495_v10 }
 0x231   :  { %v358_v23 = vadd.f32 %v354_v21, %v345_v18  ;;  %v357_v24 = vadd.f32 %v350_v22, %v344_v17 }
 0x232   :  { %756 = vmatpush3.bf16.msra.mxu1 %v755_v20 }
 0x233   :  { %456 = vmatprep.mubr.f32.mxu0 %v358_v23  ;;  %757 = vmatprep.subr.bf16.mxu1 %v840_v0 }
 0x234   :  { %457 = vmatmul.mubr.f32.vlgmr.msra.gmra.mrb[2].mxu0 %v357_v24 }
 0x236   :  { %759 = vmatpush3.bf16.msra.mxu1 %v758_v31 }
 0x237   :  { %760 = vmatprep.subr.bf16.mxu1 %v840_v0 }
 0x23a   :  { %762 = vmatpush3.bf16.msra.mxu1 %v761_v34 }
 0x23b   :  { %763 = vmatprep.subr.bf16.mxu1 %v840_v0 }
 0x23e   :  { %765 = vmatpush3.bf16.msra.mxu1 %v764_v37 }
 0x23f   :  { %766 = vmatprep.subr.bf16.mxu1 %v840_v0 }
 0x242   :  { %768 = vmatpush3.bf16.msra.mxu1 %v767_v39 }
 0x243   :  { %769 = vmatprep.subr.bf16.mxu1 %v840_v0 }
 0x246   :  { %771 = vmatpush3.bf16.msra.mxu1 %v770_v42 }
 0x307   :  { %v619_v43 = vpop.f32.mrb[2].mxu0 }
 0x308   :  { %v620_v45 = vpop.f32.mrb[3].mxu0 }
 0x309   :  { %v621_v46 = vadd.f32 %v620_v45, %v619_v43 }
 0x30b   :  { %v459_v47 = vadd.f32 %v621_v46, %v391_v44 }
 0x30d   :  { %v462_v48 = vmax.f32 %v459_v47, 0.0 }
 0x30f   :  { %v465_v49 = vrot.slane %v462_v48, 4  ;;  %v471_v50 = vmul.f32 %v462_v48, %v462_v48 }
 0x311   :  { %v466_v51 = vadd.f32 %v465_v49, %v462_v48  ;;  %v472_v52 = vrot.slane %v471_v50, 4 }
 0x313   :  { %v467_v53 = vrot.slane %v466_v51, 2  ;;  %v473_v54 = vadd.f32 %v472_v52, %v471_v50 }
 0x315   :  { %v468_v55 = vadd.f32 %v467_v53, %v466_v51  ;;  %v474_v56 = vrot.slane %v473_v54, 2 }
 0x317   :  { %v469_v57 = vrot.slane %v468_v55, 1  ;;  %v475_v58 = vadd.f32 %v474_v56, %v473_v54 }
 0x319   :  { %v476_v59 = vrot.slane %v475_v58, 1  ;;  %v470_v60 = vadd.f32 %v469_v57, %v468_v55 }
 0x31b   :  { %v477_v0 = vadd.f32 %v476_v59, %v475_v58  ;;  %v478_v61 = vmul.f32 0.125, %v470_v60 }
 0x31d   :  { %v479_v62 = vmul.f32 0.125, %v477_v0  ;;  %v480_v63 = vmul.f32 %v478_v61, %v478_v61 }
 0x31f   :  { %v481_v2 = vsub.f32 %v479_v62, %v480_v63 }
 0x321   :  { %v482_v3 = vadd.f32 1e-05, %v481_v2 }
 0x323   :  { %786 = vrsqrt.f32 %v482_v3 }
 0x32d   :  { %v787_v5 = vpop.eup %786 }
 0x32e   :  { %v484_v6 = vmul.f32 %v787_v5, %v463_v4 }
 0x330   :  { %v485_v8 = vmul.f32 %v484_v6, %v478_v61  ;;  %v487_v13 = vmul.f32 %v484_v6, %v462_v48 }
 0x332   :  { %v486_v11 = vsub.f32 %v464_v7, %v485_v8 }
 0x334   :  { %v488_v14 = vadd.f32 %v487_v13, %v486_v11 }
 0x336   :  { %679 = vmatmul.mubr.f32.vlgmr.msra.gmra.mrb[2].mxu1 %v488_v14 }
 0x409   :  { %v572_v16 = vpop.f32.mrb[2].mxu1 }
 0x40a   :  { %v573_v17 = vadd.f32 %v572_v16, %v505_v15  ;;  %v680_v18 = vpop.f32.mrb[3].mxu1 }
 0x40c   :  { %576 = vst [vmem:[%s921_s2] sm:$0xff] %v573_v17 }
 0x40d   :  { %581 = vsyncpa [#allocation3], 1 }
 0x40e   :  { %582 = vsyncpa [#allocation5], 1 }

</bundles_post_ra>
